<compile_context>
chip_gen: v7x
topology: tpu7x:2x2x1
jax: 0.10.0
libtpu: 0.0.40
codegen_flags: <defaults>
</compile_context>

<pallas_src>
import jax
import jax.numpy as jnp
import numpy as np
from jax import lax
from jax.experimental import pallas as pl
from jax.experimental.pallas import tpu as pltpu


def _round_up(x, mult):
    return (x + mult - 1) // mult * mult


# ---------------------------------------------------------------------------
# Fused kernel: gather (MXU) + weighted scatter_add (MXU, f32 acc) + MLP
# finalize, grid = (edge tiles,) as a pure reduction.
# ---------------------------------------------------------------------------
def _fused_mcnn_kernel(row_ref, col_ref, ea_ref, m_fm_ref,
                       w1a_ref, w1b_ref, w1c_ref, b1_ref, w2_ref, b2_ref,
                       out_ref, mi_fm, mo_fm, ids_ref):
    j = pl.program_id(0)
    n_pad = ids_ref.shape[0]
    te = ids_ref.shape[1]

    @pl.when(j == 0)
    def _init():
        mi_fm[...] = jnp.zeros_like(mi_fm)
        mo_fm[...] = jnp.zeros_like(mo_fm)
        # Hoisted once per kernel: node id owned by each sublane (grid-invariant).
        ids_ref[...] = lax.broadcasted_iota(jnp.int32, (n_pad, te), 0)

    ids = ids_ref[...]                                          # [n_pad, te] i32
    # One-hot incidence matrices for this edge tile (padded edges use id -1,
    # which never matches, and ea == 0, so they contribute nothing).
    onehot_row = jnp.where(row_ref[...] == ids, 1.0, 0.0)       # [n_pad, te] f32
    onehot_col = jnp.where(col_ref[...] == ids, 1.0, 0.0)       # [n_pad, te] f32
    ea = ea_ref[...]                                            # [1, te]     f32

    m_fm = m_fm_ref[...]                                        # [CF, n_pad] f32
    # Gather on the MXU (feature-major messages), then fold edge_attr in f32.
    wm_row = jnp.dot(m_fm, onehot_row,
                     preferred_element_type=jnp.float32) * ea   # ea*m[row] [CF, te]
    wm_col = jnp.dot(m_fm, onehot_col,
                     preferred_element_type=jnp.float32) * ea   # ea*m[col] [CF, te]

    # scatter_add == NT contraction over the edge axis, f32 accumulate into
    # the VMEM-resident accumulators (no separate copy-out, no HBM traffic).
    nt = (((1,), (1,)), ((), ()))
    mi_fm[...] += lax.dot_general(wm_row, onehot_col, nt,
                                  preferred_element_type=jnp.float32)
    mo_fm[...] += lax.dot_general(wm_col, onehot_row, nt,
                                  preferred_element_type=jnp.float32)

    @pl.when(j == pl.num_programs(0) - 1)
    def _finalize():
        # Shared per-class MLP fused here, feature-major [C*H, n_pad] so the
        # node axis stays lane-dense.  Weights are block-diagonal
        # kron(eye(C), W) slices, pre-transposed in the wrapper.
        z = (jnp.dot(w1a_ref[...], mi_fm[...], preferred_element_type=jnp.float32)
             + jnp.dot(w1b_ref[...], mo_fm[...], preferred_element_type=jnp.float32)
             + jnp.dot(w1c_ref[...], m_fm_ref[...], preferred_element_type=jnp.float32)
             + b1_ref[...])
        h = jnp.tanh(z)
        y = jnp.dot(w2_ref[...], h, preferred_element_type=jnp.float32) + b2_ref[...]
        out_ref[...] = jnp.tanh(y)


def multiclass_node_network(m, edge_index, edge_attr, params, *, te=512):
    """m: [N, C, F] f32, edge_index: [2, E] int, edge_attr: [E, 1, 1] f32.

    te: edge tile (multiple of 128).  Per-tile VMEM temporaries scale as
    ~3*n_pad*te*4 B (two f32 one-hots + the cached int32 iota) on top of the
    fixed residency (m table + mi/mo accumulators + MLP weights); size te so
    that total stays well under the scoped VMEM limit (32 MiB default on v7x).
    """
    N, C, F = m.shape
    E = edge_index.shape[1]
    W1, b1, W2, b2 = params          # W1: [3F, H] (= Linear.weight.T), b1: [H]
    H = W1.shape[1]
    CF, CH = C * F, C * H
    f32 = jnp.float32

    assert te % 128 == 0
    n_pad = _round_up(N, 8)
    te_eff = min(te, _round_up(E, 128))
    e_pad = _round_up(E, te_eff)
    n_edge_tiles = e_pad // te_eff

    # Node features, feature-major [C*F, n_pad]; padded nodes are zero.
    m_flat = m.reshape(N, CF).astype(f32)
    m_fm = jnp.zeros((CF, n_pad), f32).at[:, :N].set(m_flat.T)

    # Lane-dense edge vectors; padded edges get node id -1 (never matches) and
    # edge_attr 0, so they are exact no-ops in both gather and scatter.
    row_l = jnp.full((1, e_pad), -1, jnp.int32).at[0, :E].set(
        edge_index[0].astype(jnp.int32))
    col_l = jnp.full((1, e_pad), -1, jnp.int32).at[0, :E].set(
        edge_index[1].astype(jnp.int32))
    ea_l = jnp.zeros((1, e_pad), f32).at[0, :E].set(
        edge_attr.reshape(E).astype(f32))

    # Block-diagonal (per-class shared) MLP weights, pre-transposed for the
    # feature-major layout.  Tiny: [C*H, C*F] and [C*H, C*H].
    eyeC = jnp.eye(C, dtype=f32)
    w1a_t = jnp.kron(eyeC, W1[0:F, :].astype(f32)).T          # [CH, CF] (mi slice)
    w1b_t = jnp.kron(eyeC, W1[F:2 * F, :].astype(f32)).T      # [CH, CF] (mo slice)
    w1c_t = jnp.kron(eyeC, W1[2 * F:3 * F, :].astype(f32)).T  # [CH, CF] (m slice)
    w2_t = jnp.kron(eyeC, W2.astype(f32)).T                   # [CH, CH]
    b1_c = jnp.tile(b1.astype(f32), C).reshape(CH, 1)
    b2_c = jnp.tile(b2.astype(f32), C).reshape(CH, 1)

    edge_spec = lambda: pl.BlockSpec((1, te_eff), lambda j: (0, j))
    full_spec = lambda s: pl.BlockSpec(s, lambda j: (0, 0))

    # Advisory cost estimate (review item 11).
    flops = int(2 * 4 * CF * n_pad * e_pad            # gather + scatter dots
                + 2 * CF * e_pad                      # edge_attr fold
                + 2 * n_pad * (3 * CF * CH + CH * CH))  # fused MLP
    bytes_accessed = int(4 * (3 * e_pad + CF * n_pad + 3 * CH * CF
                              + CH * CH + 2 * CH + CH * n_pad))
    cost = pl.CostEstimate(flops=flops, transcendentals=int(2 * n_pad * CH),
                           bytes_accessed=bytes_accessed)

    out_fm = pl.pallas_call(
        _fused_mcnn_kernel,
        out_shape=jax.ShapeDtypeStruct((CH, n_pad), f32),
        grid_spec=pltpu.PrefetchScalarGridSpec(
            num_scalar_prefetch=0,
            grid=(n_edge_tiles,),
            in_specs=[edge_spec(), edge_spec(), edge_spec(),
                      full_spec((CF, n_pad)),
                      full_spec((CH, CF)), full_spec((CH, CF)),
                      full_spec((CH, CF)), full_spec((CH, 1)),
                      full_spec((CH, CH)), full_spec((CH, 1))],
            out_specs=pl.BlockSpec((CH, n_pad), lambda j: (0, 0)),
            scratch_shapes=[pltpu.VMEM((CF, n_pad), f32),        # mi accumulator
                            pltpu.VMEM((CF, n_pad), f32),        # mo accumulator
                            pltpu.VMEM((n_pad, te_eff), jnp.int32)]),  # cached iota
        compiler_params=pltpu.CompilerParams(
            dimension_semantics=("arbitrary",)),
        cost_estimate=cost,
    )(row_l, col_l, ea_l, m_fm, w1a_t, w1b_t, w1c_t, b1_c, w2_t, b2_c)

    # Feature-major [C*H, n_pad] -> [N, C, H].
    out = out_fm.reshape(C, H, n_pad).transpose(2, 0, 1)[:N]
    return out


def reference_forward(m, edge_index, edge_attr, params):
    """Pure-JAX reference mirroring the PyTorch module."""
    W1, b1, W2, b2 = params
    row, col = edge_index[0], edge_index[1]
    msg_i = edge_attr * m[row]                     # [E, C, F]
    msg_o = edge_attr * m[col]
    mi = jnp.zeros_like(m).at[col].add(msg_i)      # scatter_add onto col
    mo = jnp.zeros_like(m).at[row].add(msg_o)      # scatter_add onto row
    M = jnp.concatenate([mi, mo, m], axis=-1)      # [N, C, 3F]
    h = jnp.tanh(M @ W1 + b1)
    return jnp.tanh(h @ W2 + b2)                   # [N, C, H]


if __name__ == "__main__":
    # Module defaults: input_dim=2, output_dim=8, nclasses=4; small graph.
    N, E, C, F, H = 48, 300, 4, 2, 8

    key = jax.random.PRNGKey(0)
    km, kr, kc, ka, k1, k2, k3, k4 = jax.random.split(key, 8)

    m = jax.random.normal(km, (N, C, F), dtype=jnp.float32)
    row = jax.random.randint(kr, (E,), 0, N, dtype=jnp.int32)
    col = jax.random.randint(kc, (E,), 0, N, dtype=jnp.int32)
    edge_index = jnp.stack([row, col], axis=0)                 # [2, E]
    edge_attr = jax.random.uniform(ka, (E, 1, 1), dtype=jnp.float32)

    # Deterministic synthetic parameters (W stored as [in, out] = Linear.weight.T).
    W1 = 0.3 * jax.random.normal(k1, (3 * F, H), dtype=jnp.float32)
    b1 = 0.1 * jax.random.normal(k2, (H,), dtype=jnp.float32)
    W2 = 0.3 * jax.random.normal(k3, (H, H), dtype=jnp.float32)
    b2 = 0.1 * jax.random.normal(k4, (H,), dtype=jnp.float32)
    params = (W1, b1, W2, b2)

    # te=128 so the demo exercises the multi-tile edge-reduction path
    # (3 edge tiles: init / accumulate / finalize all hit).
    out = multiclass_node_network(m, edge_index, edge_attr, params, te=128)
    out = jax.block_until_ready(out)

    ref = jax.block_until_ready(reference_forward(m, edge_index, edge_attr, params))
    # Operands are f32 end-to-end now (no deliberate bf16 rounding); the loose
    # tolerance is only to stay robust to MXU f32 multi-pass rounding.
    np.testing.assert_allclose(np.asarray(out), np.asarray(ref), rtol=2e-2, atol=2e-2)

    print("KERNEL_OK")
</pallas_src>

<mosaic_0001>
module attributes {stable_mosaic.version = 11 : i64} {
  func.func @_fused_mcnn_kernel(%arg0: i32, %arg1: memref<1x128xi32, #tpu.memory_space<vmem>>, %arg2: memref<1x128xi32, #tpu.memory_space<vmem>>, %arg3: memref<1x128xf32, #tpu.memory_space<vmem>>, %arg4: memref<8x48xf32, #tpu.memory_space<vmem>>, %arg5: memref<32x8xf32, #tpu.memory_space<vmem>>, %arg6: memref<32x8xf32, #tpu.memory_space<vmem>>, %arg7: memref<32x8xf32, #tpu.memory_space<vmem>>, %arg8: memref<32x1xf32, #tpu.memory_space<vmem>>, %arg9: memref<32x32xf32, #tpu.memory_space<vmem>>, %arg10: memref<32x1xf32, #tpu.memory_space<vmem>>, %arg11: memref<32x48xf32, #tpu.memory_space<vmem>>, %arg12: memref<8x48xf32, #tpu.memory_space<vmem>>, %arg13: memref<8x48xf32, #tpu.memory_space<vmem>>, %arg14: memref<48x128xi32, #tpu.memory_space<vmem>>) attributes {dimension_semantics = [#tpu.dimension_semantics<arbitrary>], iteration_bounds = array<i64: 3>, scalar_prefetch = 0 : i64, scratch_operands = 3 : i64, tpu.core_type = #tpu.core_type<tc>, window_params = [{transform_indices = @transform_0, window_bounds = array<i64: 1, 128>}, {transform_indices = @transform_1, window_bounds = array<i64: 1, 128>}, {transform_indices = @transform_2, window_bounds = array<i64: 1, 128>}, {pipeline_mode = #tpu.pipeline_mode<synchronous>, transform_indices = @transform_3, window_bounds = array<i64: 8, 48>}, {pipeline_mode = #tpu.pipeline_mode<synchronous>, transform_indices = @transform_4, window_bounds = array<i64: 32, 8>}, {pipeline_mode = #tpu.pipeline_mode<synchronous>, transform_indices = @transform_5, window_bounds = array<i64: 32, 8>}, {pipeline_mode = #tpu.pipeline_mode<synchronous>, transform_indices = @transform_6, window_bounds = array<i64: 32, 8>}, {pipeline_mode = #tpu.pipeline_mode<synchronous>, transform_indices = @transform_7, window_bounds = array<i64: 32, 1>}, {pipeline_mode = #tpu.pipeline_mode<synchronous>, transform_indices = @transform_8, window_bounds = array<i64: 32, 32>}, {pipeline_mode = #tpu.pipeline_mode<synchronous>, transform_indices = @transform_9, window_bounds = array<i64: 32, 1>}, {pipeline_mode = #tpu.pipeline_mode<synchronous>, transform_indices = @transform_10, window_bounds = array<i64: 32, 48>}]} {
    %c0_i32 = arith.constant 0 : i32
    %0 = arith.cmpi eq, %arg0, %c0_i32 : i32
    %1 = arith.extui %0 : i1 to i32
    %c0_i32_0 = arith.constant 0 : i32
    %2 = arith.cmpi ne, %1, %c0_i32_0 : i32
    scf.if %2 {
      %cst_26 = arith.constant 0.000000e+00 : f32
      %35 = vector.broadcast %cst_26 : f32 to vector<8x48xf32>
      %c0_27 = arith.constant 0 : index
      %c0_28 = arith.constant 0 : index
      %36 = vector.load %arg12[%c0_27, %c0_28] : memref<8x48xf32, #tpu.memory_space<vmem>>, vector<8x48xf32>
      tpu.vector_store %arg12[%c0_27, %c0_28], %35 {strides = array<i32>} : memref<8x48xf32, #tpu.memory_space<vmem>>, vector<8x48xf32>,
      %cst_29 = arith.constant 0.000000e+00 : f32
      %37 = vector.broadcast %cst_29 : f32 to vector<8x48xf32>
      %c0_30 = arith.constant 0 : index
      %c0_31 = arith.constant 0 : index
      %38 = vector.load %arg13[%c0_30, %c0_31] : memref<8x48xf32, #tpu.memory_space<vmem>>, vector<8x48xf32>
      tpu.vector_store %arg13[%c0_30, %c0_31], %37 {strides = array<i32>} : memref<8x48xf32, #tpu.memory_space<vmem>>, vector<8x48xf32>,
      %39 = tpu.iota {dimensions = array<i32: 0>} : vector<48x128xi32>
      %c0_32 = arith.constant 0 : index
      %c0_33 = arith.constant 0 : index
      %40 = vector.load %arg14[%c0_32, %c0_33] : memref<48x128xi32, #tpu.memory_space<vmem>>, vector<48x128xi32>
      tpu.vector_store %arg14[%c0_32, %c0_33], %39 {strides = array<i32>} : memref<48x128xi32, #tpu.memory_space<vmem>>, vector<48x128xi32>,
    } else {
    }
    %c0 = arith.constant 0 : index
    %c0_1 = arith.constant 0 : index
    %3 = vector.load %arg14[%c0, %c0_1] : memref<48x128xi32, #tpu.memory_space<vmem>>, vector<48x128xi32>
    %c0_2 = arith.constant 0 : index
    %c0_3 = arith.constant 0 : index
    %4 = vector.load %arg1[%c0_2, %c0_3] : memref<1x128xi32, #tpu.memory_space<vmem>>, vector<1x128xi32>
    %5 = vector.broadcast %4 : vector<1x128xi32> to vector<48x128xi32>
    %6 = arith.cmpi eq, %5, %3 : vector<48x128xi32>
    %cst = arith.constant 1.000000e+00 : f32
    %cst_4 = arith.constant 0.000000e+00 : f32
    %7 = vector.broadcast %cst : f32 to vector<48x128xf32>
    %8 = vector.broadcast %cst_4 : f32 to vector<48x128xf32>
    %9 = arith.select %6, %7, %8 : vector<48x128xi1>, vector<48x128xf32>
    %c0_5 = arith.constant 0 : index
    %c0_6 = arith.constant 0 : index
    %10 = vector.load %arg2[%c0_5, %c0_6] : memref<1x128xi32, #tpu.memory_space<vmem>>, vector<1x128xi32>
    %11 = vector.broadcast %10 : vector<1x128xi32> to vector<48x128xi32>
    %12 = arith.cmpi eq, %11, %3 : vector<48x128xi32>
    %cst_7 = arith.constant 1.000000e+00 : f32
    %cst_8 = arith.constant 0.000000e+00 : f32
    %13 = vector.broadcast %cst_7 : f32 to vector<48x128xf32>
    %14 = vector.broadcast %cst_8 : f32 to vector<48x128xf32>
    %15 = arith.select %12, %13, %14 : vector<48x128xi1>, vector<48x128xf32>
    %c0_9 = arith.constant 0 : index
    %c0_10 = arith.constant 0 : index
    %16 = vector.load %arg3[%c0_9, %c0_10] : memref<1x128xf32, #tpu.memory_space<vmem>>, vector<1x128xf32>
    %c0_11 = arith.constant 0 : index
    %c0_12 = arith.constant 0 : index
    %17 = vector.load %arg4[%c0_11, %c0_12] : memref<8x48xf32, #tpu.memory_space<vmem>>, vector<8x48xf32>
    %cst_13 = arith.constant dense<0.000000e+00> : vector<8x128xf32>
    %18 = tpu.matmul %17, %9, %cst_13 {dimension_numbers = #tpu.dot_dimension_numbers<[1], [0], [0], [1], [0, 0, 1, 1], [], []>} : vector<8x48xf32>, vector<48x128xf32>, vector<8x128xf32> -> vector<8x128xf32>
    %19 = vector.broadcast %16 : vector<1x128xf32> to vector<8x128xf32>
    %20 = arith.mulf %18, %19 : vector<8x128xf32>
    %cst_14 = arith.constant dense<0.000000e+00> : vector<8x128xf32>
    %21 = tpu.matmul %17, %15, %cst_14 {dimension_numbers = #tpu.dot_dimension_numbers<[1], [0], [0], [1], [0, 0, 1, 1], [], []>} : vector<8x48xf32>, vector<48x128xf32>, vector<8x128xf32> -> vector<8x128xf32>
    %22 = vector.broadcast %16 : vector<1x128xf32> to vector<8x128xf32>
    %23 = arith.mulf %21, %22 : vector<8x128xf32>
    %c0_15 = arith.constant 0 : index
    %c0_16 = arith.constant 0 : index
    %24 = vector.load %arg12[%c0_15, %c0_16] : memref<8x48xf32, #tpu.memory_space<vmem>>, vector<8x48xf32>
    %cst_17 = arith.constant dense<0.000000e+00> : vector<8x48xf32>
    %25 = tpu.matmul %20, %15, %cst_17 {dimension_numbers = #tpu.dot_dimension_numbers<[1], [1], [0], [0], [0, 0, 1, 0], [], []>} : vector<8x128xf32>, vector<48x128xf32>, vector<8x48xf32> -> vector<8x48xf32>
    %26 = arith.addf %24, %25 : vector<8x48xf32>
    %c0_18 = arith.constant 0 : index
    %c0_19 = arith.constant 0 : index
    %27 = vector.load %arg12[%c0_18, %c0_19] : memref<8x48xf32, #tpu.memory_space<vmem>>, vector<8x48xf32>
    tpu.vector_store %arg12[%c0_18, %c0_19], %26 {strides = array<i32>} : memref<8x48xf32, #tpu.memory_space<vmem>>, vector<8x48xf32>,
    %c0_20 = arith.constant 0 : index
    %c0_21 = arith.constant 0 : index
    %28 = vector.load %arg13[%c0_20, %c0_21] : memref<8x48xf32, #tpu.memory_space<vmem>>, vector<8x48xf32>
    %cst_22 = arith.constant dense<0.000000e+00> : vector<8x48xf32>
    %29 = tpu.matmul %23, %9, %cst_22 {dimension_numbers = #tpu.dot_dimension_numbers<[1], [1], [0], [0], [0, 0, 1, 0], [], []>} : vector<8x128xf32>, vector<48x128xf32>, vector<8x48xf32> -> vector<8x48xf32>
    %30 = arith.addf %28, %29 : vector<8x48xf32>
    %c0_23 = arith.constant 0 : index
    %c0_24 = arith.constant 0 : index
    %31 = vector.load %arg13[%c0_23, %c0_24] : memref<8x48xf32, #tpu.memory_space<vmem>>, vector<8x48xf32>
    tpu.vector_store %arg13[%c0_23, %c0_24], %30 {strides = array<i32>} : memref<8x48xf32, #tpu.memory_space<vmem>>, vector<8x48xf32>,
    %c2_i32 = arith.constant 2 : i32
    %32 = arith.cmpi eq, %arg0, %c2_i32 : i32
    %33 = arith.extui %32 : i1 to i32
    %c0_i32_25 = arith.constant 0 : i32
    %34 = arith.cmpi ne, %33, %c0_i32_25 : i32
    scf.if %34 {
      %c0_26 = arith.constant 0 : index
      %c0_27 = arith.constant 0 : index
      %35 = vector.load %arg5[%c0_26, %c0_27] : memref<32x8xf32, #tpu.memory_space<vmem>>, vector<32x8xf32>
      %c0_28 = arith.constant 0 : index
      %c0_29 = arith.constant 0 : index
      %36 = vector.load %arg12[%c0_28, %c0_29] : memref<8x48xf32, #tpu.memory_space<vmem>>, vector<8x48xf32>
      %cst_30 = arith.constant dense<0.000000e+00> : vector<32x48xf32>
      %37 = tpu.matmul %35, %36, %cst_30 {dimension_numbers = #tpu.dot_dimension_numbers<[1], [0], [0], [1], [0, 0, 1, 1], [], []>} : vector<32x8xf32>, vector<8x48xf32>, vector<32x48xf32> -> vector<32x48xf32>
      %c0_31 = arith.constant 0 : index
      %c0_32 = arith.constant 0 : index
      %38 = vector.load %arg6[%c0_31, %c0_32] : memref<32x8xf32, #tpu.memory_space<vmem>>, vector<32x8xf32>
      %c0_33 = arith.constant 0 : index
      %c0_34 = arith.constant 0 : index
      %39 = vector.load %arg13[%c0_33, %c0_34] : memref<8x48xf32, #tpu.memory_space<vmem>>, vector<8x48xf32>
      %cst_35 = arith.constant dense<0.000000e+00> : vector<32x48xf32>
      %40 = tpu.matmul %38, %39, %cst_35 {dimension_numbers = #tpu.dot_dimension_numbers<[1], [0], [0], [1], [0, 0, 1, 1], [], []>} : vector<32x8xf32>, vector<8x48xf32>, vector<32x48xf32> -> vector<32x48xf32>
      %41 = arith.addf %37, %40 : vector<32x48xf32>
      %c0_36 = arith.constant 0 : index
      %c0_37 = arith.constant 0 : index
      %42 = vector.load %arg7[%c0_36, %c0_37] : memref<32x8xf32, #tpu.memory_space<vmem>>, vector<32x8xf32>
      %c0_38 = arith.constant 0 : index
      %c0_39 = arith.constant 0 : index
      %43 = vector.load %arg4[%c0_38, %c0_39] : memref<8x48xf32, #tpu.memory_space<vmem>>, vector<8x48xf32>
      %cst_40 = arith.constant dense<0.000000e+00> : vector<32x48xf32>
      %44 = tpu.matmul %42, %43, %cst_40 {dimension_numbers = #tpu.dot_dimension_numbers<[1], [0], [0], [1], [0, 0, 1, 1], [], []>} : vector<32x8xf32>, vector<8x48xf32>, vector<32x48xf32> -> vector<32x48xf32>
      %45 = arith.addf %41, %44 : vector<32x48xf32>
      %c0_41 = arith.constant 0 : index
      %c0_42 = arith.constant 0 : index
      %46 = vector.load %arg8[%c0_41, %c0_42] : memref<32x1xf32, #tpu.memory_space<vmem>>, vector<32x1xf32>
      %47 = vector.broadcast %46 : vector<32x1xf32> to vector<32x48xf32>
      %48 = arith.addf %45, %47 : vector<32x48xf32>
      %49 = math.tanh %48 : vector<32x48xf32>
      %c0_43 = arith.constant 0 : index
      %c0_44 = arith.constant 0 : index
      %50 = vector.load %arg9[%c0_43, %c0_44] : memref<32x32xf32, #tpu.memory_space<vmem>>, vector<32x32xf32>
      %cst_45 = arith.constant dense<0.000000e+00> : vector<32x48xf32>
      %51 = tpu.matmul %50, %49, %cst_45 {dimension_numbers = #tpu.dot_dimension_numbers<[1], [0], [0], [1], [0, 0, 1, 1], [], []>} : vector<32x32xf32>, vector<32x48xf32>, vector<32x48xf32> -> vector<32x48xf32>
      %c0_46 = arith.constant 0 : index
      %c0_47 = arith.constant 0 : index
      %52 = vector.load %arg10[%c0_46, %c0_47] : memref<32x1xf32, #tpu.memory_space<vmem>>, vector<32x1xf32>
      %53 = vector.broadcast %52 : vector<32x1xf32> to vector<32x48xf32>
      %54 = arith.addf %51, %53 : vector<32x48xf32>
      %55 = math.tanh %54 : vector<32x48xf32>
      %c0_48 = arith.constant 0 : index
      %c0_49 = arith.constant 0 : index
      %56 = vector.load %arg11[%c0_48, %c0_49] : memref<32x48xf32, #tpu.memory_space<vmem>>, vector<32x48xf32>
      tpu.vector_store %arg11[%c0_48, %c0_49], %55 {strides = array<i32>} : memref<32x48xf32, #tpu.memory_space<vmem>>, vector<32x48xf32>,
    } else {
    }
    return
  }
  func.func @transform_0(%arg0: i32) -> (i32, i32) {
    %c0_i32 = arith.constant 0 : i32
    %c0_i32_0 = arith.constant 0 : i32
    return %c0_i32, %arg0 : i32, i32
  }
  func.func @transform_1(%arg0: i32) -> (i32, i32) {
    %c0_i32 = arith.constant 0 : i32
    %c0_i32_0 = arith.constant 0 : i32
    return %c0_i32, %arg0 : i32, i32
  }
  func.func @transform_2(%arg0: i32) -> (i32, i32) {
    %c0_i32 = arith.constant 0 : i32
    %c0_i32_0 = arith.constant 0 : i32
    return %c0_i32, %arg0 : i32, i32
  }
  func.func @transform_3(%arg0: i32) -> (i32, i32) {
    %c0_i32 = arith.constant 0 : i32
    %c0_i32_0 = arith.constant 0 : i32
    %c0_i32_1 = arith.constant 0 : i32
    return %c0_i32, %c0_i32_0 : i32, i32
  }
  func.func @transform_4(%arg0: i32) -> (i32, i32) {
    %c0_i32 = arith.constant 0 : i32
    %c0_i32_0 = arith.constant 0 : i32
    %c0_i32_1 = arith.constant 0 : i32
    return %c0_i32, %c0_i32_0 : i32, i32
  }
  func.func @transform_5(%arg0: i32) -> (i32, i32) {
    %c0_i32 = arith.constant 0 : i32
    %c0_i32_0 = arith.constant 0 : i32
    %c0_i32_1 = arith.constant 0 : i32
    return %c0_i32, %c0_i32_0 : i32, i32
  }
  func.func @transform_6(%arg0: i32) -> (i32, i32) {
    %c0_i32 = arith.constant 0 : i32
    %c0_i32_0 = arith.constant 0 : i32
    %c0_i32_1 = arith.constant 0 : i32
    return %c0_i32, %c0_i32_0 : i32, i32
  }
  func.func @transform_7(%arg0: i32) -> (i32, i32) {
    %c0_i32 = arith.constant 0 : i32
    %c0_i32_0 = arith.constant 0 : i32
    %c0_i32_1 = arith.constant 0 : i32
    return %c0_i32, %c0_i32_0 : i32, i32
  }
  func.func @transform_8(%arg0: i32) -> (i32, i32) {
    %c0_i32 = arith.constant 0 : i32
    %c0_i32_0 = arith.constant 0 : i32
    %c0_i32_1 = arith.constant 0 : i32
    return %c0_i32, %c0_i32_0 : i32, i32
  }
  func.func @transform_9(%arg0: i32) -> (i32, i32) {
    %c0_i32 = arith.constant 0 : i32
    %c0_i32_0 = arith.constant 0 : i32
    %c0_i32_1 = arith.constant 0 : i32
    return %c0_i32, %c0_i32_0 : i32, i32
  }
  func.func @transform_10(%arg0: i32) -> (i32, i32) {
    %c0_i32 = arith.constant 0 : i32
    %c0_i32_0 = arith.constant 0 : i32
    %c0_i32_1 = arith.constant 0 : i32
    return %c0_i32, %c0_i32_0 : i32, i32
  }
}

</mosaic_0001>

<bundles_post_ra>
// kernel: tpu_custom_call.1
= control target key start
LH: loop header
LB: loop body
LE: loop exit
PB: predicated region body
PF: predicated region fallthrough
CT: control target
= control target key end

     0   :  { %15 = vsyncpa [#allocation6], 0  ;;  %s1671_s13 = smov 0   ;;  %s1884_s0 = inlined_call_operand.vmem [shape: s32[1,384], index: 0, kind: input, shape index: {}]   ;;  %s1885_s1 = inlined_call_operand.vmem [shape: s32[1,384], index: 1, kind: input, shape index: {}]   ;;  %s1886_s2 = inlined_call_operand.vmem [shape: f32[1,384], index: 2, kind: input, shape index: {}]   ;;  %s1887_s3 = inlined_call_operand.vmem [shape: f32[8,48], index: 3, kind: input, shape index: {}]   ;;  %s1888_s4 = inlined_call_operand.vmem [shape: f32[32,8], index: 4, kind: input, shape index: {}]   ;;  %s1889_s5 = inlined_call_operand.vmem [shape: f32[32,8], index: 5, kind: input, shape index: {}]   ;;  %s1890_s6 = inlined_call_operand.vmem [shape: f32[32,8], index: 6, kind: input, shape index: {}]   ;;  %s1891_s7 = inlined_call_operand.vmem [shape: f32[32,1], index: 7, kind: input, shape index: {}]   ;;  %s1892_s8 = inlined_call_operand.vmem [shape: f32[32,32], index: 8, kind: input, shape index: {}]   ;;  %s1893_s9 = inlined_call_operand.vmem [shape: f32[32,1], index: 9, kind: input, shape index: {}]   ;;  %s1894_s10 = inlined_call_operand.hbm [shape: f32[32,48], index: 10, kind: output, shape index: {}]  }
   0x1 LB: > { %s1677_s14 = sadd.s32 4294967295, %s1605_s13   ;;  %p1275_p0 = scmp.ge.s32.totalorder %s1605_s13, 1  ;;  %s1605_s13 = sphi %s1671_s13, %s21_s13  }
   0x2   : > { %p322_p1 = scmp.lt.s32.totalorder %s1605_s13, 4 }
   0x4   : > { %p323_p2 = pnand %p1275_p0, %p322_p1 }
   0x5   : > { %p359_p3 = scmp.lt.s32.totalorder (!%p323_p2), %s1677_s14, 2  ;;  %p1276_p4 = scmp.ne.s32.totalorder (!%p323_p2), %s1677_s14, 0 }
   0x6   : > { %326 = sbr.rel (%p323_p2) target bundleno = 984 (0x3d8), region = 60 }
   0xd   : > { %s1683_s15 = scalar_select %p359_p3, %s1677_s14, 2 }
   0xe   : > { %371 = sbr.rel (%p1276_p4) target bundleno = 23 (0x17), region = 64  ;;  %vm372_vm0 = vcmask (!%p1276_p4), 392192   ;;  %v375_v0 = vlaneseq (!%p1276_p4)  ;;  %v1607_v1 = vmov (!%p1276_p4), 0.0  }
   0xf   : > { %s361_s18 = scalar_lea.vmem %s1884_s0, %s1683_s15  ;;  %s364_s21 = scalar_lea.vmem %s1885_s1, %s1683_s15  ;;  %373 = vst.msk [vmem:[#allocation2] sm:$0xff] (!%p1276_p4), %vm372_vm0, %v1607_v1  ;;  %374 = vst.msk [vmem:[#allocation3] sm:$0xff] (!%p1276_p4), %vm372_vm0, %v1607_v1 }
  0x10   : > { %s367_s24 = scalar_lea.vmem %s1886_s2, %s1683_s15  ;;  %v376_v2 = vshrl.u32 (!%p1276_p4), %v375_v0, 7 }
  0x12   : > { %382 = vst [vmem:[#allocation4] sm:$0xff] (!%p1276_p4), %v376_v2  ;;  %v377_v3 = vadd.s32 (!%p1276_p4), 8, %v376_v2  ;;  %v378_v4 = vadd.s32 (!%p1276_p4), 16, %v376_v2  ;;  %v379_v5 = vadd.s32 (!%p1276_p4), 24, %v376_v2  ;;  %v380_v6 = vadd.s32 (!%p1276_p4), 32, %v376_v2 }
  0x13   : > { %v381_v7 = vadd.s32 (!%p1276_p4), 40, %v376_v2 }
  0x14   : > { %383 = vst [vmem:[#allocation4 + $0x8] sm:$0xff] (!%p1276_p4), %v377_v3  ;;  %384 = vst [vmem:[#allocation4 + $0x10] sm:$0xff] (!%p1276_p4), %v378_v4 }
  0x15   : > { %385 = vst [vmem:[#allocation4 + $0x18] sm:$0xff] %v379_v5  ;;  %386 = vst [vmem:[#allocation4 + $0x20] sm:$0xff] %v380_v6 }
  0x16   : > { %387 = vst [vmem:[#allocation4 + $0x28] sm:$0xff] %v381_v7 }
  0x17 PF: > { %v1277_v10 = vld [vmem:[%s361_s18] ss:$0 sm:$0xff]  ;;  %v1608_v11 = vmov 0.0|0.0   ;;  %v1609_v18 = vmov 1.0|1.0   ;;  %vm1610_vm15 = vmmov 0  }
  0x18   : > { %1476 = vmatprep.subr.bf16.mxu0 %v1608_v11  ;;  %1485 = vmatprep.subr.bf16.mxu1 %v1608_v11  ;;  %v1278_v12 = vld [vmem:[%s364_s21] ss:$0 sm:$0xff]  ;;  %v1611_v22 = vmov 0.0   ;;  %v655_v34 = vld [vmem:[#allocation3] sm:$0xff]  ;;  %p1306_p5 = scmp.ne.s32.totalorder %s1677_s14, 2 }
  0x19   : > { %1390 = vmatprep.mubr.msk.f32.mxu0 %vm1610_vm15, %v1611_v22  ;;  %1405 = vmatprep.mubr.msk.f32.mxu1 %vm1610_vm15, %v1611_v22  ;;  %v429_v25 = vld [vmem:[%s1887_s3] sm:$0xff]  ;;  %v733_v43 = vld [vmem:[%s1888_s4 + $0x8] sm:$0xff] (!%p1306_p5)  ;;  %v734_v45 = vld [vmem:[%s1888_s4 + $0x10] sm:$0xff] (!%p1306_p5)  ;;  %v1612_v48 = vmov (!%p1306_p5), 0  }
  0x1a   : > { %v1286_v26 = vld [vmem:[%s367_s24] ss:$0 sm:$0xff]  ;;  %1551 = vset.pattern.permute.xlu0 (!%p1306_p5), %v1612_v48  ;;  %v735_v49 = vld [vmem:[%s1888_s4 + $0x18] sm:$0xff] (!%p1306_p5)  ;;  %v738_v50 = vld [vmem:[%s1889_s5 + $0x8] sm:$0xff] (!%p1306_p5)  ;;  %1552 = vset.pattern.permute.xlu1 (!%p1306_p5), %v1612_v48 }
  0x1b   : > { %v388_v8 = vld [vmem:[#allocation4] sm:$0xff]  ;;  %v582_v33 = vld [vmem:[#allocation2] sm:$0xff]  ;;  %v1044_v55 = vld [vmem:[%s1891_s7 + $0x8] sm:$0xff] (!%p1306_p5) }
  0x1c   : > { %vm399_vm1 = vcmp.eq.s32.totalorder %v1277_v10, %v388_v8  ;;  %vm416_vm4 = vcmp.eq.s32.totalorder %v1278_v12, %v388_v8  ;;  %v732_v42 = vld [vmem:[%s1888_s4] sm:$0xff] (!%p1306_p5)  ;;  %v739_v52 = vld [vmem:[%s1889_s5 + $0x10] sm:$0xff] (!%p1306_p5)  ;;  %v938_v56 = vld [vmem:[%s1890_s6 + $0x8] sm:$0xff] (!%p1306_p5) }
  0x1d   : > { %v389_v9 = vld [vmem:[#allocation4 + $0x8] sm:$0xff]  ;;  %v390_v13 = vld [vmem:[#allocation4 + $0x10] sm:$0xff]  ;;  %v1045_v54 = vld [vmem:[%s1891_s7 + $0x10] sm:$0xff] (!%p1306_p5) }
  0x1e   : > { %vm400_vm2 = vcmp.eq.s32.totalorder %v1277_v10, %v389_v9  ;;  %v391_v14 = vld [vmem:[#allocation4 + $0x18] sm:$0xff]  ;;  %vm417_vm5 = vcmp.eq.s32.totalorder %v1278_v12, %v389_v9  ;;  %vm401_vm6 = vcmp.eq.s32.totalorder %v1277_v10, %v390_v13  ;;  %v392_v16 = vld [vmem:[#allocation4 + $0x20] sm:$0xff]  ;;  %v393_v17 = vld [vmem:[#allocation4 + $0x28] sm:$0xff]  ;;  %vm418_vm9 = vcmp.eq.s32.totalorder %v1278_v12, %v390_v13  ;;  %1059 = vperm.xlu1 (!%p1306_p5), %1552, %v1045_v54  }
  0x1f   : > { %vm1698_vm3 = vmpackc.low %vm400_vm2, %vm399_vm1  ;;  %vm402_vm7 = vcmp.eq.s32.totalorder %v1277_v10, %v391_v14  ;;  %vm419_vm10 = vcmp.eq.s32.totalorder %v1278_v12, %v391_v14  ;;  %vm403_vm13 = vcmp.eq.s32.totalorder %v1277_v10, %v392_v16  ;;  %vm404_vm14 = vcmp.eq.s32.totalorder %v1277_v10, %v393_v17  ;;  %v941_v44 = vld [vmem:[%s1887_s3] sm:$0xff] (!%p1306_p5)  ;;  %v740_v57 = vld [vmem:[%s1889_s5 + $0x18] sm:$0xff] (!%p1306_p5) }
  0x20   : > { %1478 = vmatpush3.bf16.msk.msra.mxu0 %vm1698_vm3, %v1609_v18  ;;  %vm1704_vm8 = vmpackc.low %vm417_vm5, %vm416_vm4  ;;  %vm420_vm0 = vcmp.eq.s32.totalorder %v1278_v12, %v392_v16  ;;  %vm421_vm1 = vcmp.eq.s32.totalorder %v1278_v12, %v393_v17  ;;  %vm430_vm5 = vcmask 392192   ;;  %v737_v47 = vld [vmem:[%s1889_s5] sm:$0xff] (!%p1306_p5)  ;;  %v939_v58 = vld [vmem:[%s1890_s6 + $0x10] sm:$0xff] (!%p1306_p5) }
  0x21   : > { %1487 = vmatpush3.bf16.msk.msra.mxu1 %vm1704_vm8, %v1609_v18  ;;  %1479 = vmatprep.subr.bf16.mxu0 %v1608_v11  ;;  %vm1710_vm11 = vmpackc.low %vm402_vm7, %vm401_vm6  ;;  %v937_v51 = vld [vmem:[%s1890_s6] sm:$0xff] (!%p1306_p5)  ;;  %v1046_v59 = vld [vmem:[%s1891_s7 + $0x18] sm:$0xff] (!%p1306_p5)  ;;  %vm1103_vm6 = vcmask (!%p1306_p5), 261120  }
  0x22   : > { %1488 = vmatprep.subr.bf16.mxu1 %v1608_v11  ;;  %vm1714_vm12 = vmpackc.low %vm419_vm10, %vm418_vm9  ;;  %v1043_v53 = vld [vmem:[%s1891_s7] sm:$0xff] (!%p1306_p5)  ;;  %v940_v61 = vld [vmem:[%s1890_s6 + $0x18] sm:$0xff] (!%p1306_p5)  ;;  %1064 = vperm.xlu1 (!%p1306_p5), %1552, %v1046_v59  }
  0x23   : > { %vm1724_vm2 = vmpackc.low %vm404_vm14, %vm403_vm13  ;;  %1049 = vperm.xlu0 (!%p1306_p5), %1551, %v1043_v53   ;;  %v1079_v60 = vld [vmem:[%s1893_s9] sm:$0xff] (!%p1306_p5)  ;;  %v1080_v62 = vld [vmem:[%s1893_s9 + $0x8] sm:$0xff] (!%p1306_p5) }
  0x24   : > { %1481 = vmatpush3.bf16.msk.msra.mxu0 %vm1710_vm11, %v1609_v18  ;;  %vm1728_vm4 = vmpackc.low %vm421_vm1, %vm420_vm0  ;;  %v1081_v63 = vld [vmem:[%s1893_s9 + $0x10] sm:$0xff] (!%p1306_p5)  ;;  %v1082_v0 = vld [vmem:[%s1893_s9 + $0x18] sm:$0xff] (!%p1306_p5) }
  0x25   : > { %1490 = vmatpush3.bf16.msk.msra.mxu1 %vm1714_vm12, %v1609_v18  ;;  %1482 = vmatprep.subr.bf16.mxu0 %v1608_v11  ;;  %v1075_v1 = vld [vmem:[%s1892_s8] sm:$0xff] (!%p1306_p5) }
  0x26   : > { %1491 = vmatprep.subr.bf16.mxu1 %v1608_v11  ;;  %1090 = vperm.xlu1 (!%p1306_p5), %1552, %v1080_v62  }
  0x27   : > { %1054 = vperm.xlu0 (!%p1306_p5), %1551, %v1044_v55  }
  0x28   : > { %1484 = vmatpush3.bf16.msk.msra.mxu0 %vm1724_vm2, %v1609_v18 }
  0x29   : > { %1493 = vmatpush3.bf16.msk.msra.mxu1 %vm1728_vm4, %v1609_v18  ;;  %1494 = vmatprep.subr.bf16.mxu0 %v1608_v11 }
  0x2a   : > { %1503 = vmatprep.subr.bf16.mxu1 %v1608_v11  ;;  %1100 = vperm.xlu1 (!%p1306_p5), %1552, %v1082_v0  }
  0x2b   : > { %1391 = vmatmul.mubr.msk.f32.vlgmr.msra.gmra.mrb[0].mxu0 %vm430_vm5, %v429_v25  ;;  %1085 = vperm.xlu0 (!%p1306_p5), %1551, %v1079_v60  }
  0x2c   : > { %1406 = vmatmul.mubr.msk.f32.vlgmr.msra.gmra.mrb[0].mxu1 %vm430_vm5, %v429_v25  ;;  %1420 = vmatprep.mubr.msk.f32.mxu0 %vm1610_vm15, %v1611_v22 }
  0x2d   : > { %1435 = vmatprep.mubr.msk.f32.mxu1 %vm1610_vm15, %v1611_v22 }
  0x2f   : > { %1095 = vperm.xlu0 (!%p1306_p5), %1551, %v1081_v63  }
  0x31   : > { %1496 = vmatpush3.bf16.xpose.msk.msra.mxu0 %vm1704_vm8, %v1609_v18 }
  0x32   : > { %1505 = vmatpush3.bf16.xpose.msk.msra.mxu1 %vm1698_vm3, %v1609_v18  ;;  %1497 = vmatprep.subr.bf16.mxu0 %v1608_v11  ;;  %vm742_vm3 = vcmask (!%p1306_p5), 64512  }
  0x33   : > { %1506 = vmatprep.subr.bf16.mxu1 %v1608_v11 }
  0x39   : > { %1499 = vmatpush3.bf16.xpose.msk.msra.mxu0 %vm1714_vm12, %v1609_v18 }
  0x3a   : > { %1508 = vmatpush3.bf16.xpose.msk.msra.mxu1 %vm1710_vm11, %v1609_v18  ;;  %1500 = vmatprep.subr.bf16.mxu0 %v1608_v11 }
  0x3b   : > { %1509 = vmatprep.subr.bf16.mxu1 %v1608_v11 }
  0x41   : > { %1502 = vmatpush3.bf16.xpose.msk.msra.mxu0 %vm1728_vm4, %v1609_v18 }
  0x42   : > { %1511 = vmatpush3.bf16.xpose.msk.msra.mxu1 %vm1724_vm2, %v1609_v18 }
  0x9d   : > { %v1060_v5 = vpop.permute.xlu1 (!%p1306_p5), %1059 }
  0xa1   : > { %v1065_v18 = vpop.permute.xlu1 (!%p1306_p5), %1064 }
  0xa2   : > { %v1050_v2 = vpop.permute.xlu0 (!%p1306_p5), %1049 }
  0xa6   : > { %v1055_v11 = vpop.permute.xlu0 (!%p1306_p5), %1054 }
  0xfe   : > { %v500_v27 = vpop.f32.mrb[0].mxu0 }
  0xff   : > { %v510_v28 = vmul.f32 %v1286_v26, %v500_v27  ;;  %v577_v29 = vpop.f32.mrb[0].mxu1  ;;  %v1392_v30 = vpop.f32.mrb[1].mxu0 }
 0x100   : > { %v581_v31 = vmul.f32 %v1286_v26, %v577_v29  ;;  %v1407_v32 = vpop.f32.mrb[1].mxu1  ;;  %v1077_v29 = vld [vmem:[%s1892_s8 + $0x10] sm:$0xff] (!%p1306_p5)  ;;  %v1078_v30 = vld [vmem:[%s1892_s8 + $0x18] sm:$0xff] (!%p1306_p5) }
 0x101   : > { %1421 = vmatmul.mubr.f32.vlgmr.msra.gmra.mrb[2].mxu0 %v510_v28  ;;  %v1076_v28 = vld [vmem:[%s1892_s8 + $0x8] sm:$0xff] (!%p1306_p5)  ;;  %v1086_v32 = vpop.permute.xlu0 (!%p1306_p5), %1085 }
 0x102   : > { %1436 = vmatmul.mubr.f32.vlgmr.msra.gmra.mrb[2].mxu1 %v581_v31  ;;  %1448 = vmatprep.mubr.msk.f32.mxu0 (!%p1306_p5), %vm742_vm3, %v732_v42  ;;  %v1091_v31 = vpop.permute.xlu1 (!%p1306_p5), %1090 }
 0x103   : > { %1440 = vmatprep.mubr.msk.f32.mxu1 (!%p1306_p5), %vm742_vm3, %v737_v47 }
 0x1d2   : > { %731 = sbr.rel (%p1306_p5) target bundleno = 958 (0x3be), region = 68 }
 0x1d4   : > { %v649_v35 = vpop.f32.mrb[2].mxu0 }
 0x1d5   : > { %v653_v36 = vadd.f32 %v649_v35, %v582_v33  ;;  %v722_v37 = vpop.f32.mrb[2].mxu1  ;;  %v1422_v38 = vpop.f32.mrb[3].mxu0 }
 0x1d6   : > { %v726_v39 = vadd.f32 %v722_v37, %v655_v34  ;;  %v1437_v40 = vpop.f32.mrb[3].mxu1  ;;  %v1101_v37 = vpop.permute.xlu1 (!%p1306_p5), %1100 }
 0x1d7   : > { %654 = vst.msk [vmem:[#allocation2] sm:$0xff] %vm430_vm5, %v653_v36 }
 0x1d8   : > { %727 = vst.msk [vmem:[#allocation3] sm:$0xff] %vm430_vm5, %v726_v39  ;;  %v1096_v39 = vpop.permute.xlu0 (!%p1306_p5), %1095 }
 0x1de   : > { %v736_v41 = vld [vmem:[#allocation2] sm:$0xff] }
 0x1df   : > { %1446 = vmatprep.subr.mxu0 %v736_v41  ;;  %v741_v46 = vld [vmem:[#allocation3] sm:$0xff] }
 0x1e0   : > { %1447 = vmatpush3.msra.mxu0 %v736_v41  ;;  %1438 = vmatprep.subr.mxu1 %v741_v46 }
 0x1e1   : > { %1449 = vmatmul.mubr.msk.f32.vlgmr.msra.gmra.mrb[0].mxu0 %vm742_vm3, %v733_v43  ;;  %1454 = vmatprep.subr.mxu0 %v941_v44 }
 0x1e2   : > { %1455 = vmatpush3.msra.mxu0 %v941_v44  ;;  %1451 = vmatprep.mubr.msk.f32.mxu0 %vm742_vm3, %v734_v45 }
 0x1e3   : > { %1439 = vmatpush3.msra.mxu1 %v741_v46 }
 0x1e4   : > { %1441 = vmatmul.mubr.msk.f32.vlgmr.msra.gmra.mrb[0].mxu1 %vm742_vm3, %v738_v50 }
 0x1e5   : > { %1452 = vmatmul.mubr.msk.f32.gmra.mrb[2].mxu0 %vm742_vm3, %v735_v49  ;;  %1443 = vmatprep.mubr.msk.f32.mxu1 %vm742_vm3, %v739_v52 }
 0x1e6   : > { %1456 = vmatprep.mubr.msk.f32.mxu0 %vm742_vm3, %v937_v51 }
 0x1e8   : > { %1444 = vmatmul.mubr.msk.f32.gmra.mrb[2].mxu1 %vm742_vm3, %v740_v57 }
 0x1e9   : > { %1457 = vmatmul.mubr.msk.f32.vlgmr.msra.gmra.mrb[0].mxu0 %vm742_vm3, %v938_v56  ;;  %1470 = vmatprep.mubr.msk.f32.mxu1 %vm1103_vm6, %v1075_v1 }
 0x1ea   : > { %1459 = vmatprep.mubr.msk.f32.mxu0 %vm742_vm3, %v939_v58 }
 0x1ed   : > { %1460 = vmatmul.mubr.msk.f32.gmra.mrb[2].mxu0 %vm742_vm3, %v940_v61 }
 0x2b7   : > { %v1442_v3 = vpop.f32.mrb[0].mxu1 }
 0x2b8   : > { %v821_v4 = vpop.f32.mrb[1].mxu1 }
 0x2bb   : > { %v1445_v7 = vpop.f32.mrb[2].mxu1 }
 0x2bc   : > { %v1458_v6 = vpop.f32.mrb[0].mxu0  ;;  %v831_v10 = vpop.f32.mrb[3].mxu1 }
 0x2bd   : > { %v1520_v8 = vadd.f32 %v1458_v6, %v1442_v3  ;;  %v1020_v9 = vpop.f32.mrb[1].mxu0 }
 0x2be   : > { %v1521_v12 = vadd.f32 %v1020_v9, %v821_v4 }
 0x2bf   : > { %v1068_v13 = vadd.f32 %v1520_v8, %v1055_v11 }
 0x2c0   : > { %v1067_v14 = vadd.f32 %v1521_v12, %v1050_v2  ;;  %v1461_v15 = vpop.f32.mrb[2].mxu0 }
 0x2c1   : > { %1553 = vtanh.f32 %v1068_v13  ;;  %v1522_v16 = vadd.f32 %v1461_v15, %v1445_v7  ;;  %v1030_v17 = vpop.f32.mrb[3].mxu0 }
 0x2c2   : > { %1555 = vtanh.f32 %v1067_v14  ;;  %v1523_v19 = vadd.f32 %v1030_v17, %v831_v10 }
 0x2c3   : > { %v1070_v20 = vadd.f32 %v1522_v16, %v1065_v18 }
 0x2c4   : > { %v1069_v21 = vadd.f32 %v1523_v19, %v1060_v5 }
 0x2c5   : > { %1557 = vtanh.f32 %v1070_v20 }
 0x2c6   : > { %1559 = vtanh.f32 %v1069_v21 }
 0x2cb   : > { %v1554_v22 = vpop.eup %1553 }
 0x2cc   : > { %v1556_v23 = vpop.eup %1555 }
 0x2cd   : > { %v1512_v24 = vpack.c.bf16 %v1554_v22, %v1556_v23 }
 0x2cf   : > { %v1558_v25 = vpop.eup %1557  ;;  %1513 = vmatprep.subr.bf16.mxu1 %v1512_v24 }
 0x2d0   : > { %v1560_v26 = vpop.eup %1559  ;;  %1515 = vmatpush3.bf16.msra.mxu1 %v1512_v24 }
 0x2d1   : > { %v1516_v27 = vpack.c.bf16 %v1558_v25, %v1560_v26 }
 0x2d3   : > { %1517 = vmatprep.subr.bf16.mxu1 %v1516_v27 }
 0x2d4   : > { %1519 = vmatpush3.bf16.msra.mxu1 %v1516_v27 }
 0x2d7   : > { %1471 = vmatmul.mubr.msk.f32.vlgmr.msra.gmra.mrb[4].mxu1 %vm1103_vm6, %v1076_v28 }
 0x2d8   : > { %1473 = vmatprep.mubr.msk.f32.mxu1 %vm1103_vm6, %v1077_v29 }
 0x2db   : > { %1474 = vmatmul.mubr.msk.f32.gmra.mrb[6].mxu1 %vm1103_vm6, %v1078_v30 }
 0x3aa   : > { %v1472_v33 = vpop.f32.mrb[4].mxu1 }
 0x3ab   : > { %v1188_v34 = vadd.f32 %v1472_v33, %v1091_v31  ;;  %v1182_v35 = vpop.f32.mrb[5].mxu1 }
 0x3ac   : > { %v1183_v36 = vadd.f32 %v1182_v35, %v1086_v32 }
 0x3ad   : > { %1561 = vtanh.f32 %v1188_v34 }
 0x3ae   : > { %1563 = vtanh.f32 %v1183_v36  ;;  %v1475_v38 = vpop.f32.mrb[6].mxu1 }
 0x3af   : > { %v1198_v40 = vadd.f32 %v1475_v38, %v1101_v37  ;;  %v1192_v41 = vpop.f32.mrb[7].mxu1 }
 0x3b0   : > { %v1193_v42 = vadd.f32 %v1192_v41, %v1096_v39 }
 0x3b1   : > { %1565 = vtanh.f32 %v1198_v40 }
 0x3b2   : > { %1567 = vtanh.f32 %v1193_v42 }
 0x3b7   : > { %v1562_v43 = vpop.eup %1561 }
 0x3b8   : > { %v1564_v44 = vpop.eup %1563  ;;  %1206 = vst.msk [vmem:[#allocation5 + $0x8] sm:$0xff] %vm430_vm5, %v1562_v43 }
 0x3b9   : > { %1205 = vst.msk [vmem:[#allocation5] sm:$0xff] %vm430_vm5, %v1564_v44 }
 0x3bb   : > { %v1566_v45 = vpop.eup %1565 }
 0x3bc   : > { %v1568_v46 = vpop.eup %1567  ;;  %1208 = vst.msk [vmem:[#allocation5 + $0x18] sm:$0xff] %vm430_vm5, %v1566_v45 }
 0x3bd   : > { %1207 = vst.msk [vmem:[#allocation5 + $0x10] sm:$0xff] %vm430_vm5, %v1568_v46 }
 0x3be PF: > { %p1532_p6 = scmp.eq.s32.totalorder %s1677_s14, 2  ;;  %s1613_s25 = smov [#allocation5]  }
 0x3bf   : > { %s1215_s26 = sshll.u32 %s1613_s25, 4  ;;  %s1216_s26 = int_to_ptr.vmem [resolvable:$true] %s1215_s26 }
 0x3c0   : > { %s1569_s27 = scalar_lea.vmem %s1216_s26, 512  ;;  %p1576_p10 = scmp.lt.s32.totalorder %s1216_s26, %s1216_s26 }
 0x3c1   : > { %p1570_p7 = scmp.ne.s32.totalorder %s1216_s26, %s1569_s27  ;;  %p1577_p11 = scmp.lt.s32.totalorder %s1569_s27, %s1569_s27 }
 0x3c3   : > { %p1571_p8 = pnand %p1570_p7, %p1532_p6  ;;  %p1578_p12 = por %p1577_p11, %p1576_p10 }
 0x3c5   : > { %p1572_p9 = pneg %p1571_p8 }
 0x3c7   : > { %p1579_p13 = pnand %p1578_p12, %p1572_p9 }
 0x3c9   : > { %1582 = shalt.err (!%p1579_p13)
}
 0x3ca   : > { %s1583_s30 = scalar_lea.hbm %s1894_s10, 512 }
 0x3cb   : > { %p1584_p0 = scmp.ne.s32.totalorder %s1894_s10, %s1583_s30  ;;  %p1589_p3 = scmp.lt.u32.totalorder %s1583_s30, %s1894_s10 }
 0x3cd   : > { %p1585_p1 = pnand %p1584_p0, %p1532_p6 }
 0x3cf   : > { %p1586_p2 = pneg %p1585_p1 }
 0x3d1   : > { %p1591_p4 = pnand %p1589_p3, %p1586_p2 }
 0x3d3   : > { %1594 = shalt.err (!%p1591_p4)
}
 0x3d4   : > { %s1614_s17 = smov 128   ;;  %s1615_s18 = smov 8  }
 0x3d5   : > { %1529 = dma.vmem_to_hbm [thread:$0]  (%p1532_p6), %s1216_s26, 512, %s1894_s10, [#allocation6], %s1614_s17, %s1614_s17, %s1615_s18  }
 0x3d6   : > { %1600 = dma.done.wait (%p1532_p6), [#allocation6], 512  }
 0x3d7   : > { %1602 = vsyncadd (%p1532_p6), [#allocation6], 4294966784 }
 0x3d8 PF: > { %s21_s13 = sadd.s32 1, %s1605_s13  }
 0x3d9   : > { %p18_p5 = scmp.ge.s32.totalorder %s21_s13, 5  }
 0x3db   :  { %20 = sbr.rel (!%p18_p5) target bundleno = 1 (0x1), region = 101 }
 0x3e2   :  { %1231 = vsyncpa [#allocation6], 1 }
 0x3e3   :  { %1233 = vsyncpa [#allocation6 + $0x1], 1 }

</bundles_post_ra>
